<compile_context>
chip_gen: v6e
topology: v6e:2x2x1
jax: 0.10.0
libtpu: 0.0.40
codegen_flags: <defaults>
</compile_context>

<pallas_src>
import jax
import jax.numpy as jnp
from jax.experimental import pallas as pl
from jax.experimental.pallas import tpu as pltpu


# ---------------------------------------------------------------------------
# Parameters (mirror of nn.Module.__init__, kept lazy: cls_token is unused in
# forward, so only its spec is recorded instead of materializing zeros).
# ---------------------------------------------------------------------------
def init_mae_encoder_params(emb_dim: int = 32):
    return {"cls_token": jax.ShapeDtypeStruct((1, 1, emb_dim), jnp.float32)}


# ---------------------------------------------------------------------------
# Pallas kernel: one HBM -> HBM DMA of the whole array (no VMEM staging).
# ---------------------------------------------------------------------------
def _hbm_copy_kernel(x_hbm, o_hbm):
    def body(sem):
        cp = pltpu.make_async_copy(x_hbm, o_hbm, sem)
        cp.start()
        cp.wait()

    pl.run_scoped(body, pltpu.SemaphoreType.DMA(()))


def _identity_copy_kernel_call(x: jnp.ndarray) -> jnp.ndarray:
    nbytes = x.size * x.dtype.itemsize
    return pl.pallas_call(
        _hbm_copy_kernel,
        out_shape=jax.ShapeDtypeStruct(x.shape, x.dtype),
        in_specs=[pl.BlockSpec(memory_space=pl.ANY)],
        out_specs=pl.BlockSpec(memory_space=pl.ANY),
        cost_estimate=pl.CostEstimate(
            flops=0, transcendentals=0, bytes_accessed=2 * nbytes
        ),
    )(x)


def mae_encoder_forward(x: jnp.ndarray, params=None, *, use_kernel: bool = False):
    """Forward pass of MAE_Encoder: returns x unchanged (cls_token unused).

    Default path launches no kernel at all (the op is identity).  Set
    use_kernel=True only when a materialized copy / standalone kernel is
    required (e.g. benchmarking); it runs a single HBM->HBM DMA.
    """
    del params  # cls_token is not used by the reference forward
    if not use_kernel:
        # Highest-value optimization: skip pl.pallas_call entirely.
        return x
    return _identity_copy_kernel_call(x)


if __name__ == "__main__":
    # Small shapes consistent with the module: batch=2, seq=8, emb_dim=32.
    B, S, D = 2, 8, 32
    key = jax.random.PRNGKey(0)
    x = jax.random.normal(key, (B, S, D), dtype=jnp.float32)

    params = init_mae_encoder_params(emb_dim=D)

    # Default (recommended) path: pure short-circuit, no kernel launch.
    out_fast = mae_encoder_forward(x, params)
    out_fast = jax.block_until_ready(out_fast)
    assert out_fast.shape == x.shape and out_fast.dtype == x.dtype
    assert bool(jnp.allclose(out_fast, x)), "short-circuit forward mismatch"

    # Kernel path (benchmark flag): single HBM->HBM DMA copy.
    out = mae_encoder_forward(x, params, use_kernel=True)
    out = jax.block_until_ready(out)
    assert out.shape == x.shape and out.dtype == x.dtype
    assert bool(jnp.allclose(out, x)), "identity kernel forward mismatch"

    print("KERNEL_OK")
</pallas_src>

<mosaic_0001>
module attributes {stable_mosaic.version = 11 : i64} {
  func.func @_hbm_copy_kernel(%arg0: memref<2x8x32xf32, #tpu.memory_space<any>>, %arg1: memref<2x8x32xf32, #tpu.memory_space<any>>) attributes {dimension_semantics = [], scalar_prefetch = 0 : i64, scratch_operands = 0 : i64, tpu.core_type = #tpu.core_type<tc>} {
    "tpu.region"() ({
      %0 = tpu.sem_alloc : memref<!tpu.dma_semaphore, #tpu.memory_space<semaphore_mem>>
      tpu.enqueue_dma source(%arg0 : memref<2x8x32xf32, #tpu.memory_space<any>>) target(%arg1 : memref<2x8x32xf32, #tpu.memory_space<any>>) target_semaphore(%0 : memref<!tpu.dma_semaphore, #tpu.memory_space<semaphore_mem>>)
      tpu.wait_dma2 semaphore(%0 : memref<!tpu.dma_semaphore, #tpu.memory_space<semaphore_mem>>) src(%arg0 : memref<2x8x32xf32, #tpu.memory_space<any>>) dst(%arg1 : memref<2x8x32xf32, #tpu.memory_space<any>>)
      tpu.yield
    }) : () -> ()
    return
  }
}

</mosaic_0001>

<bundles_post_ra>
// kernel: tpu_custom_call.1
= control target key start
LH: loop header
LB: loop body
LE: loop exit
PB: predicated region body
PF: predicated region fallthrough
CT: control target
= control target key end

     0   :  { %s22_s6 = smov [#allocation2]   ;;  %s23_s7 = smov 131072   ;;  %s41_s0 = inlined_call_operand.hbm [shape: f32[2,8,32], index: 0, kind: input, shape index: {}]   ;;  %s42_s1 = inlined_call_operand.hbm [shape: f32[2,8,32], index: 1, kind: output, shape index: {}]  }
   0x1   :  { %s24_s8 = smov 0  }
   0x2   :  { %12 = dma.general %s41_s0, 256, %s42_s1, %s22_s6, %s23_s7, [#allocation4], %s24_s8, 0  }
   0x3   :  { %20 = dma.done.wait [#allocation2], 256 }
   0x4   :  { %21 = vsyncadd [#allocation2], 4294967040 }

</bundles_post_ra>
